<compile_context>
chip_gen: v5e
topology: v5e:2x2
jax: 0.10.0
libtpu: 0.0.40
codegen_flags: <defaults>
</compile_context>

<pallas_src>
import functools

import numpy as np
import jax
import jax.numpy as jnp
from jax.experimental import pallas as pl
from jax.experimental.pallas import tpu as pltpu

EPS = 1e-5


def _block_kernel(x_ref, w0_ref, w1_ref, m_ref, o_ref, *, W):
    # x_ref: (C, NHW)   w{0,1}_ref: (C, 9*C)   m_ref: (9, C, NHW)   o_ref: (C, NHW)
    C, NHW = x_ref.shape
    x = x_ref[...]

    def bn_relu(a):
        # BatchNorm2d(affine=False), training mode: per-channel batch stats,
        # biased variance.  Channels sit on sublanes -> reduce along lanes.
        mu = jnp.mean(a, axis=1, keepdims=True)
        var = jnp.mean((a - mu) ** 2, axis=1, keepdims=True)
        return jnp.maximum((a - mu) * jax.lax.rsqrt(var + EPS), 0.0)

    def conv3x3(a, w_ref):
        # im2col: 9 lane-rotated copies of the (C, NHW) activation, boundary
        # masked, stacked along sublanes -> a single K = 9*C MXU matmul.
        taps = []
        for dy in range(3):
            for dx in range(3):
                off = (dy - 1) * W + (dx - 1)   # flattened source-lane offset
                if off == 0:
                    taps.append(a)              # centre tap is never out of bounds
                else:
                    shifted = pltpu.roll(a, shift=(-off) % NHW, axis=1)
                    taps.append(shifted * m_ref[dy * 3 + dx])
        patch = jnp.concatenate(taps, axis=0)   # (9*C, NHW)
        return jnp.dot(w_ref[...], patch, preferred_element_type=jnp.float32)

    h = conv3x3(bn_relu(x), w0_ref)
    h = conv3x3(bn_relu(h), w1_ref)
    o_ref[...] = (x + h).astype(o_ref.dtype)


def _tap_masks(N, C, H, W):
    # (9, C, N*H*W) float32: 1 where tap (dy, dx) reads a valid (non-padded) pixel.
    yy, xx = np.meshgrid(np.arange(H), np.arange(W), indexing="ij")
    masks = np.empty((9, C, N * H * W), np.float32)
    for dy in range(3):
        for dx in range(3):
            valid = ((yy + dy - 1 >= 0) & (yy + dy - 1 < H)
                     & (xx + dx - 1 >= 0) & (xx + dx - 1 < W))
            flat = np.broadcast_to(valid[None], (N, H, W)).reshape(-1)
            masks[dy * 3 + dx] = flat.astype(np.float32)[None, :]
    return jnp.asarray(masks)


@jax.jit
def block_forward(x_nchw, w0, w1):
    """x_nchw: (N, C, H, W) float32; w0, w1: (C, C, 3, 3) float32 (OIHW)."""
    N, C, H, W = x_nchw.shape
    NHW = N * H * W

    # Lane-dense layout: channels on sublanes, flattened N*H*W on lanes.
    x2 = jnp.transpose(x_nchw, (1, 0, 2, 3)).reshape(C, NHW).astype(jnp.float32)
    # OIHW -> (C_out, kh*kw*C_in); column = (dy*3+dx)*C_in + c_in, matching patch rows.
    w0k = jnp.transpose(w0, (0, 2, 3, 1)).reshape(C, 9 * C).astype(jnp.float32)
    w1k = jnp.transpose(w1, (0, 2, 3, 1)).reshape(C, 9 * C).astype(jnp.float32)
    masks = _tap_masks(N, C, H, W)

    out2 = pl.pallas_call(
        functools.partial(_block_kernel, W=W),
        out_shape=jax.ShapeDtypeStruct((C, NHW), jnp.float32),
        grid=(1,),
        in_specs=[
            pl.BlockSpec((C, NHW), lambda i: (0, 0)),
            pl.BlockSpec((C, 9 * C), lambda i: (0, 0)),
            pl.BlockSpec((C, 9 * C), lambda i: (0, 0)),
            pl.BlockSpec((9, C, NHW), lambda i: (0, 0, 0)),
        ],
        out_specs=pl.BlockSpec((C, NHW), lambda i: (0, 0)),
        input_output_aliases={0: 0},   # reuse the x buffer for the output
        compiler_params=pltpu.CompilerParams(dimension_semantics=("arbitrary",)),
    )(x2, w0k, w1k, masks)
    # TODO(synk): for large N*H*W / v7x (64 MiB VMEM, 2 TCs) switch to a spatially
    # tiled grid with a two-pass BN instead of this single-shot whole-tensor kernel.

    return jnp.transpose(out2.reshape(C, N, H, W), (1, 0, 2, 3)).astype(x_nchw.dtype)


def ref_block(xn, a, b):
    # Pure-JAX reference mirroring the PyTorch forward.
    def bn_relu(v):
        m = v.mean(axis=(0, 2, 3), keepdims=True)
        var = ((v - m) ** 2).mean(axis=(0, 2, 3), keepdims=True)
        return jnp.maximum((v - m) / jnp.sqrt(var + EPS), 0.0)

    def conv(v, w):
        return jax.lax.conv_general_dilated(
            v, w, (1, 1), "SAME", dimension_numbers=("NCHW", "OIHW", "NCHW"))

    h = conv(bn_relu(xn), a)
    h = conv(bn_relu(h), b)
    return xn + h


if __name__ == "__main__":
    key = jax.random.PRNGKey(0)
    kx, k0, k1 = jax.random.split(key, 3)

    N, C, H, W = 2, 8, 8, 8   # batch=2, width=8, 8x8 spatial -> NHW = 128 lanes
    x = jax.random.normal(kx, (N, C, H, W), dtype=jnp.float32)

    # kaiming_normal_(mode='fan_out', nonlinearity='relu'): std = sqrt(2 / (C_out*kh*kw))
    std = float(np.sqrt(2.0 / (C * 3 * 3)))
    w0 = std * jax.random.normal(k0, (C, C, 3, 3), dtype=jnp.float32)
    w1 = std * jax.random.normal(k1, (C, C, 3, 3), dtype=jnp.float32)

    y = jax.block_until_ready(block_forward(x, w0, w1))

    y_ref = np.asarray(ref_block(x, w0, w1))
    assert np.allclose(np.asarray(y), y_ref, atol=1e-4, rtol=1e-4), \
        float(np.max(np.abs(np.asarray(y) - y_ref)))

    print("KERNEL_OK")
</pallas_src>

<mosaic_0001>
module attributes {stable_mosaic.version = 11 : i64} {
  func.func @_block_kernel(%arg0: i32, %arg1: memref<8x128xf32, #tpu.memory_space<vmem>>, %arg2: memref<8x72xf32, #tpu.memory_space<vmem>>, %arg3: memref<8x72xf32, #tpu.memory_space<vmem>>, %arg4: memref<9x8x128xf32, #tpu.memory_space<vmem>>, %arg5: memref<8x128xf32, #tpu.memory_space<vmem>>) attributes {dimension_semantics = [#tpu.dimension_semantics<arbitrary>], iteration_bounds = array<i64: 1>, scalar_prefetch = 0 : i64, scratch_operands = 0 : i64, tpu.core_type = #tpu.core_type<tc>, window_params = [{pipeline_mode = #tpu.pipeline_mode<synchronous>, transform_indices = @transform_0, window_bounds = array<i64: 8, 128>}, {pipeline_mode = #tpu.pipeline_mode<synchronous>, transform_indices = @transform_1, window_bounds = array<i64: 8, 72>}, {pipeline_mode = #tpu.pipeline_mode<synchronous>, transform_indices = @transform_2, window_bounds = array<i64: 8, 72>}, {pipeline_mode = #tpu.pipeline_mode<synchronous>, transform_indices = @transform_3, window_bounds = array<i64: 9, 8, 128>}, {pipeline_mode = #tpu.pipeline_mode<synchronous>, transform_indices = @transform_4, window_bounds = array<i64: 8, 128>}]} {
    %c0 = arith.constant 0 : index
    %c0_0 = arith.constant 0 : index
    %0 = vector.load %arg1[%c0, %c0_0] : memref<8x128xf32, #tpu.memory_space<vmem>>, vector<8x128xf32>
    %cst = arith.constant dense<0.000000e+00> : vector<8xf32>
    %1 = vector.multi_reduction <add>, %0, %cst [1] : vector<8x128xf32> to vector<8xf32>
    %2 = vector.shape_cast %1 : vector<8xf32> to vector<8x1xf32>
    %cst_1 = arith.constant 1.280000e+02 : f32
    %3 = vector.broadcast %cst_1 : f32 to vector<8x1xf32>
    %4 = arith.divf %2, %3 : vector<8x1xf32>
    %5 = vector.broadcast %4 : vector<8x1xf32> to vector<8x128xf32>
    %6 = arith.subf %0, %5 : vector<8x128xf32>
    %7 = arith.mulf %6, %6 : vector<8x128xf32>
    %cst_2 = arith.constant dense<0.000000e+00> : vector<8xf32>
    %8 = vector.multi_reduction <add>, %7, %cst_2 [1] : vector<8x128xf32> to vector<8xf32>
    %9 = vector.shape_cast %8 : vector<8xf32> to vector<8x1xf32>
    %cst_3 = arith.constant 1.280000e+02 : f32
    %10 = vector.broadcast %cst_3 : f32 to vector<8x1xf32>
    %11 = arith.divf %9, %10 : vector<8x1xf32>
    %12 = vector.broadcast %4 : vector<8x1xf32> to vector<8x128xf32>
    %13 = arith.subf %0, %12 : vector<8x128xf32>
    %cst_4 = arith.constant 9.99999974E-6 : f32
    %14 = vector.broadcast %cst_4 : f32 to vector<8x1xf32>
    %15 = arith.addf %11, %14 : vector<8x1xf32>
    %16 = math.rsqrt %15 : vector<8x1xf32>
    %17 = vector.broadcast %16 : vector<8x1xf32> to vector<8x128xf32>
    %18 = arith.mulf %13, %17 : vector<8x128xf32>
    %cst_5 = arith.constant 0.000000e+00 : f32
    %19 = vector.broadcast %cst_5 : f32 to vector<8x128xf32>
    %20 = arith.maximumf %18, %19 : vector<8x128xf32>
    %c9_i32 = arith.constant 9 : i32
    %21 = tpu.dynamic_rotate %20 by %c9_i32 dim 1 : vector<8x128xf32>, i32 -> vector<8x128xf32>
    %c0_6 = arith.constant 0 : index
    %c0_7 = arith.constant 0 : index
    %c0_8 = arith.constant 0 : index
    %22 = vector.load %arg4[%c0_6, %c0_7, %c0_8] : memref<9x8x128xf32, #tpu.memory_space<vmem>>, vector<1x8x128xf32>
    %23 = vector.shape_cast %22 : vector<1x8x128xf32> to vector<8x128xf32>
    %24 = arith.mulf %21, %23 : vector<8x128xf32>
    %c8_i32 = arith.constant 8 : i32
    %25 = tpu.dynamic_rotate %20 by %c8_i32 dim 1 : vector<8x128xf32>, i32 -> vector<8x128xf32>
    %c1 = arith.constant 1 : index
    %c0_9 = arith.constant 0 : index
    %c0_10 = arith.constant 0 : index
    %26 = vector.load %arg4[%c1, %c0_9, %c0_10] : memref<9x8x128xf32, #tpu.memory_space<vmem>>, vector<1x8x128xf32>
    %27 = vector.shape_cast %26 : vector<1x8x128xf32> to vector<8x128xf32>
    %28 = arith.mulf %25, %27 : vector<8x128xf32>
    %c7_i32 = arith.constant 7 : i32
    %29 = tpu.dynamic_rotate %20 by %c7_i32 dim 1 : vector<8x128xf32>, i32 -> vector<8x128xf32>
    %c2 = arith.constant 2 : index
    %c0_11 = arith.constant 0 : index
    %c0_12 = arith.constant 0 : index
    %30 = vector.load %arg4[%c2, %c0_11, %c0_12] : memref<9x8x128xf32, #tpu.memory_space<vmem>>, vector<1x8x128xf32>
    %31 = vector.shape_cast %30 : vector<1x8x128xf32> to vector<8x128xf32>
    %32 = arith.mulf %29, %31 : vector<8x128xf32>
    %c1_i32 = arith.constant 1 : i32
    %33 = tpu.dynamic_rotate %20 by %c1_i32 dim 1 : vector<8x128xf32>, i32 -> vector<8x128xf32>
    %c3 = arith.constant 3 : index
    %c0_13 = arith.constant 0 : index
    %c0_14 = arith.constant 0 : index
    %34 = vector.load %arg4[%c3, %c0_13, %c0_14] : memref<9x8x128xf32, #tpu.memory_space<vmem>>, vector<1x8x128xf32>
    %35 = vector.shape_cast %34 : vector<1x8x128xf32> to vector<8x128xf32>
    %36 = arith.mulf %33, %35 : vector<8x128xf32>
    %c127_i32 = arith.constant 127 : i32
    %37 = tpu.dynamic_rotate %20 by %c127_i32 dim 1 : vector<8x128xf32>, i32 -> vector<8x128xf32>
    %c5 = arith.constant 5 : index
    %c0_15 = arith.constant 0 : index
    %c0_16 = arith.constant 0 : index
    %38 = vector.load %arg4[%c5, %c0_15, %c0_16] : memref<9x8x128xf32, #tpu.memory_space<vmem>>, vector<1x8x128xf32>
    %39 = vector.shape_cast %38 : vector<1x8x128xf32> to vector<8x128xf32>
    %40 = arith.mulf %37, %39 : vector<8x128xf32>
    %c121_i32 = arith.constant 121 : i32
    %41 = tpu.dynamic_rotate %20 by %c121_i32 dim 1 : vector<8x128xf32>, i32 -> vector<8x128xf32>
    %c6 = arith.constant 6 : index
    %c0_17 = arith.constant 0 : index
    %c0_18 = arith.constant 0 : index
    %42 = vector.load %arg4[%c6, %c0_17, %c0_18] : memref<9x8x128xf32, #tpu.memory_space<vmem>>, vector<1x8x128xf32>
    %43 = vector.shape_cast %42 : vector<1x8x128xf32> to vector<8x128xf32>
    %44 = arith.mulf %41, %43 : vector<8x128xf32>
    %c120_i32 = arith.constant 120 : i32
    %45 = tpu.dynamic_rotate %20 by %c120_i32 dim 1 : vector<8x128xf32>, i32 -> vector<8x128xf32>
    %c7 = arith.constant 7 : index
    %c0_19 = arith.constant 0 : index
    %c0_20 = arith.constant 0 : index
    %46 = vector.load %arg4[%c7, %c0_19, %c0_20] : memref<9x8x128xf32, #tpu.memory_space<vmem>>, vector<1x8x128xf32>
    %47 = vector.shape_cast %46 : vector<1x8x128xf32> to vector<8x128xf32>
    %48 = arith.mulf %45, %47 : vector<8x128xf32>
    %c119_i32 = arith.constant 119 : i32
    %49 = tpu.dynamic_rotate %20 by %c119_i32 dim 1 : vector<8x128xf32>, i32 -> vector<8x128xf32>
    %c8 = arith.constant 8 : index
    %c0_21 = arith.constant 0 : index
    %c0_22 = arith.constant 0 : index
    %50 = vector.load %arg4[%c8, %c0_21, %c0_22] : memref<9x8x128xf32, #tpu.memory_space<vmem>>, vector<1x8x128xf32>
    %51 = vector.shape_cast %50 : vector<1x8x128xf32> to vector<8x128xf32>
    %52 = arith.mulf %49, %51 : vector<8x128xf32>
    %53 = tpu.concatenate %24, %28, %32, %36, %20, %40, %44, %48, %52 in 0 : vector<8x128xf32>, vector<8x128xf32>, vector<8x128xf32>, vector<8x128xf32>, vector<8x128xf32>, vector<8x128xf32>, vector<8x128xf32>, vector<8x128xf32>, vector<8x128xf32> -> vector<72x128xf32>
    %c0_23 = arith.constant 0 : index
    %c0_24 = arith.constant 0 : index
    %54 = vector.load %arg2[%c0_23, %c0_24] : memref<8x72xf32, #tpu.memory_space<vmem>>, vector<8x72xf32>
    %cst_25 = arith.constant dense<0.000000e+00> : vector<8x128xf32>
    %55 = tpu.matmul %54, %53, %cst_25 {dimension_numbers = #tpu.dot_dimension_numbers<[1], [0], [0], [1], [0, 0, 1, 1], [], []>} : vector<8x72xf32>, vector<72x128xf32>, vector<8x128xf32> -> vector<8x128xf32>
    %cst_26 = arith.constant dense<0.000000e+00> : vector<8xf32>
    %56 = vector.multi_reduction <add>, %55, %cst_26 [1] : vector<8x128xf32> to vector<8xf32>
    %57 = vector.shape_cast %56 : vector<8xf32> to vector<8x1xf32>
    %cst_27 = arith.constant 1.280000e+02 : f32
    %58 = vector.broadcast %cst_27 : f32 to vector<8x1xf32>
    %59 = arith.divf %57, %58 : vector<8x1xf32>
    %60 = vector.broadcast %59 : vector<8x1xf32> to vector<8x128xf32>
    %61 = arith.subf %55, %60 : vector<8x128xf32>
    %62 = arith.mulf %61, %61 : vector<8x128xf32>
    %cst_28 = arith.constant dense<0.000000e+00> : vector<8xf32>
    %63 = vector.multi_reduction <add>, %62, %cst_28 [1] : vector<8x128xf32> to vector<8xf32>
    %64 = vector.shape_cast %63 : vector<8xf32> to vector<8x1xf32>
    %cst_29 = arith.constant 1.280000e+02 : f32
    %65 = vector.broadcast %cst_29 : f32 to vector<8x1xf32>
    %66 = arith.divf %64, %65 : vector<8x1xf32>
    %67 = vector.broadcast %59 : vector<8x1xf32> to vector<8x128xf32>
    %68 = arith.subf %55, %67 : vector<8x128xf32>
    %cst_30 = arith.constant 9.99999974E-6 : f32
    %69 = vector.broadcast %cst_30 : f32 to vector<8x1xf32>
    %70 = arith.addf %66, %69 : vector<8x1xf32>
    %71 = math.rsqrt %70 : vector<8x1xf32>
    %72 = vector.broadcast %71 : vector<8x1xf32> to vector<8x128xf32>
    %73 = arith.mulf %68, %72 : vector<8x128xf32>
    %cst_31 = arith.constant 0.000000e+00 : f32
    %74 = vector.broadcast %cst_31 : f32 to vector<8x128xf32>
    %75 = arith.maximumf %73, %74 : vector<8x128xf32>
    %c9_i32_32 = arith.constant 9 : i32
    %76 = tpu.dynamic_rotate %75 by %c9_i32_32 dim 1 : vector<8x128xf32>, i32 -> vector<8x128xf32>
    %c0_33 = arith.constant 0 : index
    %c0_34 = arith.constant 0 : index
    %c0_35 = arith.constant 0 : index
    %77 = vector.load %arg4[%c0_33, %c0_34, %c0_35] : memref<9x8x128xf32, #tpu.memory_space<vmem>>, vector<1x8x128xf32>
    %78 = vector.shape_cast %77 : vector<1x8x128xf32> to vector<8x128xf32>
    %79 = arith.mulf %76, %78 : vector<8x128xf32>
    %c8_i32_36 = arith.constant 8 : i32
    %80 = tpu.dynamic_rotate %75 by %c8_i32_36 dim 1 : vector<8x128xf32>, i32 -> vector<8x128xf32>
    %c1_37 = arith.constant 1 : index
    %c0_38 = arith.constant 0 : index
    %c0_39 = arith.constant 0 : index
    %81 = vector.load %arg4[%c1_37, %c0_38, %c0_39] : memref<9x8x128xf32, #tpu.memory_space<vmem>>, vector<1x8x128xf32>
    %82 = vector.shape_cast %81 : vector<1x8x128xf32> to vector<8x128xf32>
    %83 = arith.mulf %80, %82 : vector<8x128xf32>
    %c7_i32_40 = arith.constant 7 : i32
    %84 = tpu.dynamic_rotate %75 by %c7_i32_40 dim 1 : vector<8x128xf32>, i32 -> vector<8x128xf32>
    %c2_41 = arith.constant 2 : index
    %c0_42 = arith.constant 0 : index
    %c0_43 = arith.constant 0 : index
    %85 = vector.load %arg4[%c2_41, %c0_42, %c0_43] : memref<9x8x128xf32, #tpu.memory_space<vmem>>, vector<1x8x128xf32>
    %86 = vector.shape_cast %85 : vector<1x8x128xf32> to vector<8x128xf32>
    %87 = arith.mulf %84, %86 : vector<8x128xf32>
    %c1_i32_44 = arith.constant 1 : i32
    %88 = tpu.dynamic_rotate %75 by %c1_i32_44 dim 1 : vector<8x128xf32>, i32 -> vector<8x128xf32>
    %c3_45 = arith.constant 3 : index
    %c0_46 = arith.constant 0 : index
    %c0_47 = arith.constant 0 : index
    %89 = vector.load %arg4[%c3_45, %c0_46, %c0_47] : memref<9x8x128xf32, #tpu.memory_space<vmem>>, vector<1x8x128xf32>
    %90 = vector.shape_cast %89 : vector<1x8x128xf32> to vector<8x128xf32>
    %91 = arith.mulf %88, %90 : vector<8x128xf32>
    %c127_i32_48 = arith.constant 127 : i32
    %92 = tpu.dynamic_rotate %75 by %c127_i32_48 dim 1 : vector<8x128xf32>, i32 -> vector<8x128xf32>
    %c5_49 = arith.constant 5 : index
    %c0_50 = arith.constant 0 : index
    %c0_51 = arith.constant 0 : index
    %93 = vector.load %arg4[%c5_49, %c0_50, %c0_51] : memref<9x8x128xf32, #tpu.memory_space<vmem>>, vector<1x8x128xf32>
    %94 = vector.shape_cast %93 : vector<1x8x128xf32> to vector<8x128xf32>
    %95 = arith.mulf %92, %94 : vector<8x128xf32>
    %c121_i32_52 = arith.constant 121 : i32
    %96 = tpu.dynamic_rotate %75 by %c121_i32_52 dim 1 : vector<8x128xf32>, i32 -> vector<8x128xf32>
    %c6_53 = arith.constant 6 : index
    %c0_54 = arith.constant 0 : index
    %c0_55 = arith.constant 0 : index
    %97 = vector.load %arg4[%c6_53, %c0_54, %c0_55] : memref<9x8x128xf32, #tpu.memory_space<vmem>>, vector<1x8x128xf32>
    %98 = vector.shape_cast %97 : vector<1x8x128xf32> to vector<8x128xf32>
    %99 = arith.mulf %96, %98 : vector<8x128xf32>
    %c120_i32_56 = arith.constant 120 : i32
    %100 = tpu.dynamic_rotate %75 by %c120_i32_56 dim 1 : vector<8x128xf32>, i32 -> vector<8x128xf32>
    %c7_57 = arith.constant 7 : index
    %c0_58 = arith.constant 0 : index
    %c0_59 = arith.constant 0 : index
    %101 = vector.load %arg4[%c7_57, %c0_58, %c0_59] : memref<9x8x128xf32, #tpu.memory_space<vmem>>, vector<1x8x128xf32>
    %102 = vector.shape_cast %101 : vector<1x8x128xf32> to vector<8x128xf32>
    %103 = arith.mulf %100, %102 : vector<8x128xf32>
    %c119_i32_60 = arith.constant 119 : i32
    %104 = tpu.dynamic_rotate %75 by %c119_i32_60 dim 1 : vector<8x128xf32>, i32 -> vector<8x128xf32>
    %c8_61 = arith.constant 8 : index
    %c0_62 = arith.constant 0 : index
    %c0_63 = arith.constant 0 : index
    %105 = vector.load %arg4[%c8_61, %c0_62, %c0_63] : memref<9x8x128xf32, #tpu.memory_space<vmem>>, vector<1x8x128xf32>
    %106 = vector.shape_cast %105 : vector<1x8x128xf32> to vector<8x128xf32>
    %107 = arith.mulf %104, %106 : vector<8x128xf32>
    %108 = tpu.concatenate %79, %83, %87, %91, %75, %95, %99, %103, %107 in 0 : vector<8x128xf32>, vector<8x128xf32>, vector<8x128xf32>, vector<8x128xf32>, vector<8x128xf32>, vector<8x128xf32>, vector<8x128xf32>, vector<8x128xf32>, vector<8x128xf32> -> vector<72x128xf32>
    %c0_64 = arith.constant 0 : index
    %c0_65 = arith.constant 0 : index
    %109 = vector.load %arg3[%c0_64, %c0_65] : memref<8x72xf32, #tpu.memory_space<vmem>>, vector<8x72xf32>
    %cst_66 = arith.constant dense<0.000000e+00> : vector<8x128xf32>
    %110 = tpu.matmul %109, %108, %cst_66 {dimension_numbers = #tpu.dot_dimension_numbers<[1], [0], [0], [1], [0, 0, 1, 1], [], []>} : vector<8x72xf32>, vector<72x128xf32>, vector<8x128xf32> -> vector<8x128xf32>
    %111 = arith.addf %0, %110 : vector<8x128xf32>
    %c0_67 = arith.constant 0 : index
    %c0_68 = arith.constant 0 : index
    %112 = vector.load %arg5[%c0_67, %c0_68] : memref<8x128xf32, #tpu.memory_space<vmem>>, vector<8x128xf32>
    tpu.vector_store %arg5[%c0_67, %c0_68], %111 {strides = array<i32>} : memref<8x128xf32, #tpu.memory_space<vmem>>, vector<8x128xf32>,
    return
  }
  func.func @transform_0(%arg0: i32) -> (i32, i32) {
    %c0_i32 = arith.constant 0 : i32
    %c0_i32_0 = arith.constant 0 : i32
    %c0_i32_1 = arith.constant 0 : i32
    return %c0_i32, %c0_i32_0 : i32, i32
  }
  func.func @transform_1(%arg0: i32) -> (i32, i32) {
    %c0_i32 = arith.constant 0 : i32
    %c0_i32_0 = arith.constant 0 : i32
    %c0_i32_1 = arith.constant 0 : i32
    return %c0_i32, %c0_i32_0 : i32, i32
  }
  func.func @transform_2(%arg0: i32) -> (i32, i32) {
    %c0_i32 = arith.constant 0 : i32
    %c0_i32_0 = arith.constant 0 : i32
    %c0_i32_1 = arith.constant 0 : i32
    return %c0_i32, %c0_i32_0 : i32, i32
  }
  func.func @transform_3(%arg0: i32) -> (i32, i32, i32) {
    %c0_i32 = arith.constant 0 : i32
    %c0_i32_0 = arith.constant 0 : i32
    %c0_i32_1 = arith.constant 0 : i32
    %c0_i32_2 = arith.constant 0 : i32
    return %c0_i32, %c0_i32_0, %c0_i32_1 : i32, i32, i32
  }
  func.func @transform_4(%arg0: i32) -> (i32, i32) {
    %c0_i32 = arith.constant 0 : i32
    %c0_i32_0 = arith.constant 0 : i32
    %c0_i32_1 = arith.constant 0 : i32
    return %c0_i32, %c0_i32_0 : i32, i32
  }
}

</mosaic_0001>

<bundles_post_ra>
// kernel: block_forward.1
= control target key start
LH: loop header
LB: loop body
LE: loop exit
PB: predicated region body
PF: predicated region fallthrough
CT: control target
= control target key end

     0   :  { %v209_v1 = vmov 128.0   ;;  %s211_s17 = smov 121   ;;  %s212_s18 = smov 119   ;;  %vm86_vm4 = vcmask 588800   ;;  %s340_s0 = inlined_call_operand.vmem [shape: f32[8,128], index: 0, kind: input, shape index: {}, may-alias: {0,4}]   ;;  %s341_s3 = inlined_call_operand.vmem [shape: f32[9,8,128], index: 3, kind: input, shape index: {}]   ;;  %s342_s1 = inlined_call_operand.vmem [shape: f32[8,72], index: 1, kind: input, shape index: {}]   ;;  %s343_s2 = inlined_call_operand.vmem [shape: f32[8,72], index: 2, kind: input, shape index: {}]   ;;  %s344_s4 = inlined_call_operand.vmem [shape: f32[8,128], index: 4, kind: output, shape index: {}, may-alias: {0,4}]  }
   0x1   :  { %v246_v0 = vld [vmem:[%s340_s0] sm:$0xff]  ;;  %203 = vrcp.f32 %v209_v1  ;;  %s210_s0 = smov 1   ;;  %s213_s19 = smov 127   ;;  %v271_v28 = vld [vmem:[%s341_s3 + $0x38] sm:$0xff]  ;;  %v276_v29 = vld [vmem:[%s341_s3 + $0x30] sm:$0xff] }
   0x2   :  { %18 = vadd.xlane.f32.xlu0 %v246_v0  ;;  %s214_s20 = smov 120   ;;  %s215_s21 = smov 8   ;;  %v265_v25 = vld [vmem:[%s341_s3 + $0x40] sm:$0xff]  ;;  %v282_v33 = vld [vmem:[%s341_s3 + $0x28] sm:$0xff]  ;;  %v289_v36 = vld [vmem:[%s341_s3 + $0x18] sm:$0xff] }
   0x3   :  { %s216_s22 = smov 7   ;;  %s217_s23 = smov 9   ;;  %v294_v38 = vld [vmem:[%s341_s3 + $0x10] sm:$0xff]  ;;  %v300_v41 = vld [vmem:[%s341_s3 + $0x8] sm:$0xff]  ;;  %v307_v45 = vld [vmem:[%s341_s3] sm:$0xff] }
   0x4   :  { %v85_v48 = vld [vmem:[%s342_s1] sm:$0xff] }
   0x7   :  { %v204_v2 = vpop.eup %203 }
   0x8   :  { %v21_v3 = vmul.f32 128.0, %v204_v2  ;;  %vm25_vm0 = vweird.f32 %v204_v2 }
   0xa   :  { %v22_v4 = vsub.f32 1.0, %v21_v3 }
   0xc   :  { %v23_v5 = vmul.f32 %v204_v2, %v22_v4 }
   0xe   :  { %v24_v6 = vadd.f32 %v204_v2, %v23_v5 }
  0x10   :  { %v249_v7 = vsel %vm25_vm0, %v204_v2, %v24_v6 }
  0x75   :  { %v19_v8 = vpop.xlane.xlu0 %18 }
  0x76   :  { %v27_v9 = vmul.f32 %v249_v7, %v19_v8 }
  0x78   :  { %v28_v10 = vsub.f32 %v246_v0, %v27_v9 }
  0x7a   :  { %v29_v11 = vmul.f32 %v28_v10, %v28_v10 }
  0x7c   :  { %30 = vadd.xlane.f32.xlu0 %v29_v11 }
  0xef   :  { %v31_v12 = vpop.xlane.xlu0 %30 }
  0xf0   :  { %v32_v13 = vmul.f32 %v31_v12, %v249_v7 }
  0xf2   :  { %v33_v14 = vadd.f32 1e-05, %v32_v13 }
  0xf4   :  { %205 = vrsqrt.f32 %v33_v14  ;;  %vm40_vm2 = vweird.f32 %v33_v14 }
  0xfa   :  { %v206_v15 = vpop.eup %205 }
  0xfb   :  { %v35_v16 = vmul.f32 %v206_v15, %v33_v14  ;;  %vm41_vm1 = vweird.f32 %v206_v15 }
  0xfc   :  { %vm42_vm3 = vmor %vm40_vm2, %vm41_vm1 }
  0xfd   :  { %v36_v17 = vmul.f32 %v206_v15, %v35_v16 }
  0xff   :  { %v37_v18 = vmul.f32 0.5, %v36_v17 }
 0x101   :  { %v38_v19 = vsub.f32 1.5, %v37_v18 }
 0x103   :  { %v39_v20 = vmul.f32 %v206_v15, %v38_v19  ;;  %v155_v19 = vld [vmem:[%s343_s2] sm:$0xff] }
 0x105   :  { %v43_v21 = vsel %vm42_vm3, %v206_v15, %v39_v20 }
 0x106   :  { %v44_v22 = vmul.f32 %v43_v21, %v28_v10 }
 0x108   :  { %v45_v23 = vmax.f32 %v44_v22, 0.0 }
 0x10a   :  { %60 = vrot.lane.b32.xlu0 %v45_v23, %s210_s0  ;;  %70 = vrot.lane.b32.xlu2 %v45_v23, %s211_s17 }
 0x10b   :  { %80 = vrot.lane.b32.xlu1 %v45_v23, %s212_s18 }
 0x112   :  { %65 = vrot.lane.b32.xlu2 %v45_v23, %s213_s19 }
 0x113   :  { %75 = vrot.lane.b32.xlu1 %v45_v23, %s214_s20 }
 0x11a   :  { %50 = vrot.lane.b32.xlu2 %v45_v23, %s215_s21 }
 0x11b   :  { %55 = vrot.lane.b32.xlu1 %v45_v23, %s216_s22 }
 0x123   :  { %46 = vrot.lane.b32.xlu1 %v45_v23, %s217_s23 }
 0x164   :  { %v71_v24 = vpop.permute.xlu2 %70 }
 0x165   :  { %v74_v34 = vmul.f32 %v276_v29, %v71_v24 }
 0x16c   :  { %v66_v30 = vpop.permute.xlu2 %65 }
 0x16d   :  { %v69_v35 = vmul.f32 %v282_v33, %v66_v30 }
 0x174   :  { %v51_v42 = vpop.permute.xlu2 %50 }
 0x175   :  { %v54_v44 = vmul.f32 %v300_v41, %v51_v42 }
 0x17c   :  { %v61_v37 = vpop.permute.xlu0 %60 }
 0x17d   :  { %v81_v26 = vpop.permute.xlu1 %80  ;;  %v64_v40 = vmul.f32 %v289_v36, %v61_v37 }
 0x17e   :  { %v84_v27 = vmul.f32 %v265_v25, %v81_v26 }
 0x180   :  { %97 = vmatpush.msra.mxu0 %v84_v27 }
 0x185   :  { %v76_v31 = vpop.permute.xlu1 %75 }
 0x186   :  { %v79_v32 = vmul.f32 %v271_v28, %v76_v31 }
 0x188   :  { %98 = vmatpush.msra.mxu0 %v79_v32 }
 0x18a   :  { %99 = vmatpush.msra.mxu0 %v74_v34 }
 0x18c   :  { %100 = vmatpush.msra.mxu0 %v69_v35 }
 0x18d   :  { %v56_v39 = vpop.permute.xlu1 %55 }
 0x18e   :  { %101 = vmatpush.msra.mxu0 %v45_v23  ;;  %v59_v43 = vmul.f32 %v294_v38, %v56_v39 }
 0x190   :  { %102 = vmatpush.msra.mxu0 %v64_v40 }
 0x192   :  { %103 = vmatpush.msra.mxu0 %v59_v43 }
 0x194   :  { %104 = vmatpush.msra.mxu0 %v54_v44 }
 0x195   :  { %v47_v46 = vpop.permute.xlu1 %46 }
 0x196   :  { %v49_v47 = vmul.f32 %v307_v45, %v47_v46 }
 0x198   :  { %105 = vmatpush.msra.mxu0 %v49_v47 }
 0x199   :  { %192 = vmatmul.msk.f32.vlgmr.msra.gmra.mxu0 %vm86_vm4, %v85_v48 }
 0x216   :  { %v107_v49 = vpop.f32.mrf.mxu0 }
 0x217   :  { %110 = vadd.xlane.f32.xlu2 %v107_v49 }
 0x28a   :  { %v111_v50 = vpop.xlane.xlu2 %110 }
 0x28b   :  { %v112_v51 = vmul.f32 %v111_v50, %v249_v7 }
 0x28d   :  { %v113_v52 = vsub.f32 %v107_v49, %v112_v51 }
 0x28f   :  { %v114_v53 = vmul.f32 %v113_v52, %v113_v52 }
 0x291   :  { %115 = vadd.xlane.f32.xlu1 %v114_v53 }
 0x304   :  { %v116_v54 = vpop.xlane.xlu1 %115 }
 0x305   :  { %v117_v55 = vmul.f32 %v116_v54, %v249_v7 }
 0x307   :  { %v118_v56 = vadd.f32 1e-05, %v117_v55 }
 0x309   :  { %207 = vrsqrt.f32 %v118_v56  ;;  %vm125_vm6 = vweird.f32 %v118_v56 }
 0x30f   :  { %v208_v57 = vpop.eup %207 }
 0x310   :  { %v120_v58 = vmul.f32 %v208_v57, %v118_v56  ;;  %vm126_vm5 = vweird.f32 %v208_v57 }
 0x311   :  { %vm127_vm7 = vmor %vm125_vm6, %vm126_vm5 }
 0x312   :  { %v121_v59 = vmul.f32 %v208_v57, %v120_v58 }
 0x314   :  { %v122_v60 = vmul.f32 0.5, %v121_v59 }
 0x316   :  { %v123_v61 = vsub.f32 1.5, %v122_v60 }
 0x318   :  { %v124_v62 = vmul.f32 %v208_v57, %v123_v61 }
 0x31a   :  { %v128_v63 = vsel %vm127_vm7, %v208_v57, %v124_v62 }
 0x31b   :  { %v129_v1 = vmul.f32 %v128_v63, %v113_v52 }
 0x31d   :  { %v130_v2 = vmax.f32 %v129_v1, 0.0 }
 0x31f   :  { %134 = vrot.lane.b32.xlu1 %v130_v2, %s215_s21  ;;  %140 = vrot.lane.b32.xlu2 %v130_v2, %s210_s0 }
 0x320   :  { %152 = vrot.lane.b32.xlu0 %v130_v2, %s212_s18 }
 0x328   :  { %149 = vrot.lane.b32.xlu0 %v130_v2, %s214_s20 }
 0x330   :  { %146 = vrot.lane.b32.xlu0 %v130_v2, %s211_s17 }
 0x338   :  { %143 = vrot.lane.b32.xlu0 %v130_v2, %s213_s19 }
 0x340   :  { %137 = vrot.lane.b32.xlu0 %v130_v2, %s216_s22 }
 0x348   :  { %131 = vrot.lane.b32.xlu0 %v130_v2, %s217_s23 }
 0x379   :  { %v141_v11 = vpop.permute.xlu2 %140 }
 0x37a   :  { %v142_v12 = vmul.f32 %v289_v36, %v141_v11 }
 0x391   :  { %v135_v13 = vpop.permute.xlu1 %134 }
 0x392   :  { %v153_v3 = vpop.permute.xlu0 %152  ;;  %v136_v16 = vmul.f32 %v300_v41, %v135_v13 }
 0x393   :  { %v154_v4 = vmul.f32 %v265_v25, %v153_v3 }
 0x395   :  { %166 = vmatpush.msra.mxu1 %v154_v4 }
 0x39a   :  { %v150_v5 = vpop.permute.xlu0 %149 }
 0x39b   :  { %v151_v6 = vmul.f32 %v271_v28, %v150_v5 }
 0x39d   :  { %167 = vmatpush.msra.mxu1 %v151_v6 }
 0x3a2   :  { %v147_v7 = vpop.permute.xlu0 %146 }
 0x3a3   :  { %v148_v8 = vmul.f32 %v276_v29, %v147_v7 }
 0x3a5   :  { %168 = vmatpush.msra.mxu1 %v148_v8 }
 0x3aa   :  { %v144_v9 = vpop.permute.xlu0 %143 }
 0x3ab   :  { %v145_v10 = vmul.f32 %v282_v33, %v144_v9 }
 0x3ad   :  { %169 = vmatpush.msra.mxu1 %v145_v10 }
 0x3af   :  { %170 = vmatpush.msra.mxu1 %v130_v2 }
 0x3b1   :  { %171 = vmatpush.msra.mxu1 %v142_v12 }
 0x3b2   :  { %v138_v14 = vpop.permute.xlu0 %137 }
 0x3b3   :  { %v139_v15 = vmul.f32 %v294_v38, %v138_v14 }
 0x3b5   :  { %172 = vmatpush.msra.mxu1 %v139_v15 }
 0x3b7   :  { %173 = vmatpush.msra.mxu1 %v136_v16 }
 0x3ba   :  { %v132_v17 = vpop.permute.xlu0 %131 }
 0x3bb   :  { %v133_v18 = vmul.f32 %v132_v17, %v307_v45 }
 0x3bd   :  { %174 = vmatpush.msra.mxu1 %v133_v18 }
 0x3be   :  { %193 = vmatmul.msk.f32.vlgmr.msra.gmra.mxu1 %vm86_vm4, %v155_v19 }
 0x43b   :  { %v176_v20 = vpop.f32.mrf.mxu1 }
 0x43c   :  { %v179_v21 = vadd.f32 %v176_v20, %v246_v0 }
 0x43e   :  { %180 = vst [vmem:[%s344_s4] sm:$0xff] %v179_v21 }

</bundles_post_ra>
